<compile_context>
chip_gen: v5e
topology: v5e:2x2
jax: 0.10.0
libtpu: 0.0.40
codegen_flags: <defaults>
</compile_context>

<pallas_src>
import functools
import math

import jax
import jax.numpy as jnp
from jax.experimental import pallas as pl
from jax.experimental.pallas import tpu as pltpu


def _round_up(x, m):
    return (x + m - 1) // m * m


@functools.lru_cache(maxsize=None)
def _vmem_limit_bytes():
    """Per-generation VMEM budget: big tiles on v5e/v6e (128 MiB), headroom on v7x (64 MiB)."""
    try:
        cap = int(pltpu.get_tpu_info().vmem_capacity_bytes)
    except Exception:
        return 64 * 1024 * 1024
    if cap >= 128 * 1024 * 1024:
        return 100 * 1024 * 1024          # v5e / v6e
    return 48 * 1024 * 1024               # v7x: leave Mosaic internal-scratch headroom


def _copy_probe_kernel(x_ref, o_ref):
    o_ref[...] = x_ref[...]


@functools.lru_cache(maxsize=None)
def _single_buffering_supported():
    """Probe pipeline_mode=pl.Buffered(1) (single-buffered grid-resident blocks)."""
    try:
        fn = pl.pallas_call(
            _copy_probe_kernel,
            out_shape=jax.ShapeDtypeStruct((8, 128), jnp.float32),
            grid_spec=pltpu.PrefetchScalarGridSpec(
                num_scalar_prefetch=0,
                grid=(1,),
                in_specs=[pl.BlockSpec((8, 128), lambda i: (0, 0),
                                       pipeline_mode=pl.Buffered(1))],
                out_specs=pl.BlockSpec((8, 128), lambda i: (0, 0)),
            ),
        )
        jax.block_until_ready(fn(jnp.zeros((8, 128), jnp.float32)))
        return True
    except Exception:
        return False


def _resident_spec(block_shape, index_map):
    """BlockSpec for a grid-resident block (constant index_map): single-buffer it when the
    installed jax supports pipeline_mode -- halves that block's VMEM residency."""
    if _single_buffering_supported():
        return pl.BlockSpec(block_shape, index_map, pipeline_mode=pl.Buffered(1))
    return pl.BlockSpec(block_shape, index_map)


# ---------------------------------------------------------------------------
# Position-wise linear:  Y = X @ W^T + b   (W_Q, W_K, W_V, W_O; fused QKV)
# ---------------------------------------------------------------------------
def _linear_kernel(x_ref, w_ref, b_ref, o_ref):
    # MXU matmul in the input dtype, f32 accumulation, f32 bias add, one cast on store.
    y = jnp.dot(x_ref[...], w_ref[...], preferred_element_type=jnp.float32)
    o_ref[...] = (y + b_ref[...]).astype(o_ref.dtype)


def _linear_ktiled_kernel(x_ref, w_ref, b_ref, o_ref, acc_ref):
    # K-tiled reduction with an f32 VMEM accumulator (used when the full weight cannot
    # stay grid-resident, e.g. large d_model on v7x's 64 MiB VMEM).
    kk = pl.program_id(1)

    @pl.when(kk == 0)
    def _():
        acc_ref[...] = jnp.zeros_like(acc_ref)

    acc_ref[...] += jnp.dot(x_ref[...], w_ref[...], preferred_element_type=jnp.float32)

    @pl.when(kk == pl.num_programs(1) - 1)
    def _():
        o_ref[...] = (acc_ref[...] + b_ref[...]).astype(o_ref.dtype)


def _linear(x2, weight, bias, *, tm=512, tk=512,
            resident_weight_max_bytes=16 * 1024 * 1024):
    """x2: (M, Din). weight: (Dout, Din) PyTorch layout. bias: (Dout,)."""
    M, Din = x2.shape
    Dout = weight.shape[0]

    # One-time (hoisted) layout / dtype plumbing -- never repeated per grid step.
    w_t = weight.T.astype(x2.dtype)                   # (Din, Dout)
    b2 = bias.reshape(1, Dout).astype(jnp.float32)    # bias added in f32

    tm = min(tm, _round_up(M, 8))                     # big row tile; pad ragged tail
    m_pad = _round_up(M, tm)
    if m_pad != M:
        x2 = jnp.pad(x2, ((0, m_pad - M), (0, 0)))

    vmem_limit = _vmem_limit_bytes()
    w_bytes = Din * Dout * w_t.dtype.itemsize

    if w_bytes <= resident_weight_max_bytes:
        # Weight + bias stay VMEM-resident across the whole grid, single-buffered.
        out = pl.pallas_call(
            _linear_kernel,
            out_shape=jax.ShapeDtypeStruct((m_pad, Dout), x2.dtype),
            grid_spec=pltpu.PrefetchScalarGridSpec(
                num_scalar_prefetch=0,
                grid=(m_pad // tm,),
                in_specs=[
                    pl.BlockSpec((tm, Din), lambda i: (i, 0)),       # X row tile
                    _resident_spec((Din, Dout), lambda i: (0, 0)),   # W^T, grid-resident
                    _resident_spec((1, Dout), lambda i: (0, 0)),     # bias
                ],
                out_specs=pl.BlockSpec((tm, Dout), lambda i: (i, 0)),
            ),
            compiler_params=pltpu.CompilerParams(
                dimension_semantics=("parallel",),
                vmem_limit_bytes=vmem_limit,
            ),
        )(x2, w_t, b2)
    else:
        # K-tiled path (f32 accumulator, reduction axis last & "arbitrary").
        # TODO(synk): also tile Dout (N axis) for very wide fused projections.
        tk = min(tk, _round_up(Din, 128))
        k_pad = _round_up(Din, tk)
        if k_pad != Din:
            x2 = jnp.pad(x2, ((0, 0), (0, k_pad - Din)))
            w_t = jnp.pad(w_t, ((0, k_pad - Din), (0, 0)))
        out = pl.pallas_call(
            _linear_ktiled_kernel,
            out_shape=jax.ShapeDtypeStruct((m_pad, Dout), x2.dtype),
            grid_spec=pltpu.PrefetchScalarGridSpec(
                num_scalar_prefetch=0,
                grid=(m_pad // tm, k_pad // tk),
                in_specs=[
                    pl.BlockSpec((tm, tk), lambda i, kk: (i, kk)),
                    pl.BlockSpec((tk, Dout), lambda i, kk: (kk, 0)),
                    _resident_spec((1, Dout), lambda i, kk: (0, 0)),
                ],
                out_specs=pl.BlockSpec((tm, Dout), lambda i, kk: (i, 0)),
                scratch_shapes=[pltpu.VMEM((tm, Dout), jnp.float32)],
            ),
            compiler_params=pltpu.CompilerParams(
                dimension_semantics=("parallel", "arbitrary"),
                vmem_limit_bytes=vmem_limit,
            ),
        )(x2, w_t, b2)

    return out[:M] if m_pad != M else out


# ---------------------------------------------------------------------------
# Multi-head scaled dot-product attention: one (batch, head-group) per grid step.
# ---------------------------------------------------------------------------
def _attn_body(q_ref, k_ref, v_ref, o_ref, scale, m_ref=None):
    """q/k/v/o refs: (S, G, hd) tiles for one (batch, head-group) grid step.
    m_ref: optional (S, S) int8 mask (0 == masked), shared across heads."""
    G = q_ref.shape[1]
    scale = jnp.asarray(scale, q_ref.dtype)
    masked = None if m_ref is None else (m_ref[...] == 0)        # hoisted out of head loop
    for g in range(G):  # static unroll: plain 2-D MXU dots per head (input dtype operands)
        q = q_ref[:, g, :] * scale                               # fold 1/sqrt(d_model) into q
        k = k_ref[:, g, :]
        s = jnp.dot(q, k.T, preferred_element_type=jnp.float32)  # (S, S) f32 scores
        if masked is not None:
            s = jnp.where(masked, jnp.float32(-1e9), s)          # masked_fill(mask == 0, -1e9)
        s = s - jnp.max(s, axis=-1, keepdims=True)
        e = jnp.exp(s)
        p = e * pl.reciprocal(jnp.sum(e, axis=-1, keepdims=True), approx=True)
        o = jnp.dot(p.astype(v_ref.dtype), v_ref[:, g, :],
                    preferred_element_type=jnp.float32)          # (S, hd)
        o_ref[:, g, :] = o.astype(o_ref.dtype)


def _attn_kernel(q_ref, k_ref, v_ref, o_ref, *, scale):
    _attn_body(q_ref, k_ref, v_ref, o_ref, scale)


def _attn_kernel_masked(q_ref, k_ref, v_ref, m_ref, o_ref, *, scale):
    _attn_body(q_ref, k_ref, v_ref, o_ref, scale, m_ref=m_ref)


def _head_group(n_head):
    # Heads per grid step: keep the second-to-last block dim (8,128)-friendly while
    # leaving enough "parallel" grid steps to feed both v7x TensorCores.
    return 8 if n_head % 8 == 0 else n_head


def _mha(scale, mask3, mask_batched, *, qkv=None, q=None, k=None, v=None):
    """Either qkv=(B,S,3,H,hd) (fused self-attention) or q/k/v=(B,S,H,hd).
    Returns (B,S,H,hd). No HBM head transposes anywhere (BlockSpecs gather the slices)."""
    if qkv is not None:
        B, S, _, H, hd = qkv.shape
        dtype = qkv.dtype
    else:
        B, S, H, hd = q.shape
        dtype = q.dtype
    G = _head_group(H)
    grid = (B, H // G)

    if qkv is not None:
        in_arrays = [qkv, qkv, qkv]
        in_specs = [
            pl.BlockSpec((None, S, None, G, hd), lambda b, g: (b, 0, 0, g, 0)),  # Q plane
            pl.BlockSpec((None, S, None, G, hd), lambda b, g: (b, 0, 1, g, 0)),  # K plane
            pl.BlockSpec((None, S, None, G, hd), lambda b, g: (b, 0, 2, g, 0)),  # V plane
        ]
    else:
        in_arrays = [q, k, v]
        spec = pl.BlockSpec((None, S, G, hd), lambda b, g: (b, 0, g, 0))
        in_specs = [spec, spec, spec]

    if mask3 is not None:
        in_arrays.append(mask3)
        if mask_batched:
            in_specs.append(pl.BlockSpec((None, S, S), lambda b, g: (b, 0, 0)))
        else:  # one (S,S) int8 mask shared by every grid step: grid-resident
            in_specs.append(_resident_spec((None, S, S), lambda b, g: (0, 0, 0)))
        kernel = functools.partial(_attn_kernel_masked, scale=scale)
    else:
        kernel = functools.partial(_attn_kernel, scale=scale)

    # TODO(synk): flash-style K/V-tiled online softmax once the (S,S) f32 score tile
    # stops fitting VMEM (S >~ 2k, earliest on v7x's 64 MiB).
    return pl.pallas_call(
        kernel,
        out_shape=jax.ShapeDtypeStruct((B, S, H, hd), dtype),
        grid_spec=pltpu.PrefetchScalarGridSpec(
            num_scalar_prefetch=0,
            grid=grid,
            in_specs=in_specs,
            out_specs=pl.BlockSpec((None, S, G, hd), lambda b, g: (b, 0, g, 0)),
        ),
        compiler_params=pltpu.CompilerParams(
            dimension_semantics=("parallel", "parallel"),
            vmem_limit_bytes=_vmem_limit_bytes(),
        ),
    )(*in_arrays)


# ---------------------------------------------------------------------------
# Full TransformerXLAttention forward.
# ---------------------------------------------------------------------------
def transformer_xl_attention(Q, K, V, params, *, n_head, mask=None):
    B, S, D = Q.shape
    assert D % n_head == 0
    hd = D // n_head
    M = B * S
    scale = 1.0 / math.sqrt(D)   # module divides by sqrt(d_model), NOT sqrt(head_dim)

    # Mask: normalize ONCE to a small int8 (1|B, S, S) array (0 == masked);
    # never materialize a (B*H, S, S) float mask in HBM.
    mask3 = None
    mask_batched = False
    if mask is not None:
        m = jnp.asarray(mask)
        while m.ndim < 4:
            m = m[None]
        # TODO(synk): per-head masks (mask.shape[1] > 1) are not supported.
        assert m.ndim == 4 and m.shape[1] == 1, "mask must broadcast over heads"
        m = jnp.broadcast_to(m, (m.shape[0], 1, S, S))
        mask3 = (m.reshape(m.shape[0], S, S) != 0).astype(jnp.int8)
        mask_batched = mask3.shape[0] != 1
        assert (not mask_batched) or mask3.shape[0] == B

    if Q is K and K is V:
        # Fused QKV projection (self-attention): read each activation row tile once.
        w_qkv = jnp.concatenate([params["wq"], params["wk"], params["wv"]], axis=0)
        b_qkv = jnp.concatenate([params["bq"], params["bk"], params["bv"]], axis=0)
        qkv = _linear(Q.reshape(M, D), w_qkv, b_qkv)            # (M, 3D)
        qkv5 = qkv.reshape(B, S, 3, n_head, hd)                 # free metadata reshape
        attn = _mha(scale, mask3, mask_batched, qkv=qkv5)
    else:
        q4 = _linear(Q.reshape(M, D), params["wq"], params["bq"]).reshape(B, S, n_head, hd)
        k4 = _linear(K.reshape(M, D), params["wk"], params["bk"]).reshape(B, S, n_head, hd)
        v4 = _linear(V.reshape(M, D), params["wv"], params["bv"]).reshape(B, S, n_head, hd)
        attn = _mha(scale, mask3, mask_batched, q=q4, k=k4, v=v4)

    # combine_heads is free: (B, S, H, hd) is already row-major (B*S, D).
    out = _linear(attn.reshape(M, D), params["wo"], params["bo"])
    return out.reshape(B, S, D)


# ---------------------------------------------------------------------------
# Pure-JAX reference and self-test.
# ---------------------------------------------------------------------------
def _reference(Q, K, V, params, n_head, mask=None):
    B, S, D = Q.shape
    hd = D // n_head

    def lin(x, w, b):
        return x @ w.T + b

    q = lin(Q, params["wq"], params["bq"])
    k = lin(K, params["wk"], params["bk"])
    v = lin(V, params["wv"], params["bv"])

    def split(x):
        return jnp.transpose(x.reshape(B, S, n_head, hd), (0, 2, 1, 3))

    q, k, v = split(q), split(k), split(v)
    s = jnp.einsum("bhqd,bhkd->bhqk", q, k) / math.sqrt(D)
    if mask is not None:
        s = jnp.where(jnp.broadcast_to(jnp.asarray(mask), s.shape) == 0, -1e9, s)
    p = jax.nn.softmax(s, axis=-1)
    o = jnp.einsum("bhqk,bhkd->bhqd", p, v)
    o = jnp.transpose(o, (0, 2, 1, 3)).reshape(B, S, D)
    return lin(o, params["wo"], params["bo"])


if __name__ == "__main__":
    key = jax.random.PRNGKey(0)
    batch, seq, d_model, n_head = 2, 8, 32, 4

    keys = jax.random.split(key, 10)
    x = jax.random.normal(keys[0], (batch, seq, d_model), dtype=jnp.float32)
    y = jax.random.normal(keys[9], (batch, seq, d_model), dtype=jnp.float32)

    bound = 1.0 / math.sqrt(d_model)

    def lin_init(kw, kb):
        w = jax.random.uniform(kw, (d_model, d_model), minval=-bound, maxval=bound,
                               dtype=jnp.float32)
        b = jax.random.uniform(kb, (d_model,), minval=-bound, maxval=bound,
                               dtype=jnp.float32)
        return w, b

    wq, bq = lin_init(keys[1], keys[2])
    wk, bk = lin_init(keys[3], keys[4])
    wv, bv = lin_init(keys[5], keys[6])
    wo, bo = lin_init(keys[7], keys[8])
    params = dict(wq=wq, bq=bq, wk=wk, bk=bk, wv=wv, bv=bv, wo=wo, bo=bo)

    tol = dict(atol=3e-3, rtol=3e-3)

    # 1) self-attention (fused QKV path), no mask
    out = jax.block_until_ready(transformer_xl_attention(x, x, x, params, n_head=n_head))
    ref = _reference(x, x, x, params, n_head)
    assert out.shape == x.shape and out.dtype == x.dtype
    assert jnp.allclose(out, ref, **tol), "mismatch: self-attention, no mask"

    # 2) self-attention with a (1,1,S,S) causal mask (grid-resident int8 mask path)
    causal = jnp.tril(jnp.ones((seq, seq), dtype=jnp.float32))[None, None]
    out_m = jax.block_until_ready(
        transformer_xl_attention(x, x, x, params, n_head=n_head, mask=causal))
    ref_m = _reference(x, x, x, params, n_head, mask=causal)
    assert jnp.allclose(out_m, ref_m, **tol), "mismatch: self-attention, causal mask"

    # 3) cross-attention (Q != K == V -> unfused projection path)
    out_x = jax.block_until_ready(transformer_xl_attention(x, y, y, params, n_head=n_head))
    ref_x = _reference(x, y, y, params, n_head)
    assert jnp.allclose(out_x, ref_x, **tol), "mismatch: cross-attention"

    # 4) exercise the K-tiled linear path (taken when the weight is too large to be
    #    grid-resident, e.g. big d_model on v7x)
    x2 = x.reshape(batch * seq, d_model)
    y_kt = jax.block_until_ready(_linear(x2, wq, bq, resident_weight_max_bytes=0))
    assert jnp.allclose(y_kt, x2 @ wq.T + bq, **tol), "mismatch: K-tiled linear"

    print("KERNEL_OK")
</pallas_src>

<mosaic_0001>
module attributes {stable_mosaic.version = 11 : i64} {
  func.func @_copy_probe_kernel(%arg0: i32, %arg1: memref<8x128xf32, #tpu.memory_space<vmem>>, %arg2: memref<8x128xf32, #tpu.memory_space<vmem>>) attributes {dimension_semantics = [#tpu.dimension_semantics<arbitrary>], iteration_bounds = array<i64: 1>, scalar_prefetch = 0 : i64, scratch_operands = 0 : i64, tpu.core_type = #tpu.core_type<tc>, window_params = [{pipeline_mode = #tpu.pipeline_mode<synchronous>, transform_indices = @transform_0, window_bounds = array<i64: 8, 128>}, {pipeline_mode = #tpu.pipeline_mode<synchronous>, transform_indices = @transform_1, window_bounds = array<i64: 8, 128>}]} {
    %c0 = arith.constant 0 : index
    %c0_0 = arith.constant 0 : index
    %0 = vector.load %arg1[%c0, %c0_0] : memref<8x128xf32, #tpu.memory_space<vmem>>, vector<8x128xf32>
    %c0_1 = arith.constant 0 : index
    %c0_2 = arith.constant 0 : index
    %1 = vector.load %arg2[%c0_1, %c0_2] : memref<8x128xf32, #tpu.memory_space<vmem>>, vector<8x128xf32>
    tpu.vector_store %arg2[%c0_1, %c0_2], %0 {strides = array<i32>} : memref<8x128xf32, #tpu.memory_space<vmem>>, vector<8x128xf32>,
    return
  }
  func.func @transform_0(%arg0: i32) -> (i32, i32) {
    %c0_i32 = arith.constant 0 : i32
    %c0_i32_0 = arith.constant 0 : i32
    %c0_i32_1 = arith.constant 0 : i32
    return %c0_i32, %c0_i32_0 : i32, i32
  }
  func.func @transform_1(%arg0: i32) -> (i32, i32) {
    %c0_i32 = arith.constant 0 : i32
    %c0_i32_0 = arith.constant 0 : i32
    %c0_i32_1 = arith.constant 0 : i32
    return %c0_i32, %c0_i32_0 : i32, i32
  }
}

module attributes {stable_mosaic.version = 11 : i64} {
  func.func @_linear_kernel(%arg0: i32, %arg1: memref<16x32xf32, #tpu.memory_space<vmem>>, %arg2: memref<32x96xf32, #tpu.memory_space<vmem>>, %arg3: memref<1x96xf32, #tpu.memory_space<vmem>>, %arg4: memref<16x96xf32, #tpu.memory_space<vmem>>) attributes {dimension_semantics = [#tpu.dimension_semantics<parallel>], iteration_bounds = array<i64: 1>, scalar_prefetch = 0 : i64, scratch_operands = 0 : i64, tpu.core_type = #tpu.core_type<tc>, window_params = [{transform_indices = @transform_0, window_bounds = array<i64: 16, 32>}, {pipeline_mode = #tpu.pipeline_mode<synchronous>, transform_indices = @transform_1, window_bounds = array<i64: 32, 96>}, {pipeline_mode = #tpu.pipeline_mode<synchronous>, transform_indices = @transform_2, window_bounds = array<i64: 1, 96>}, {transform_indices = @transform_3, window_bounds = array<i64: 16, 96>}]} {
    %c0 = arith.constant 0 : index
    %c0_0 = arith.constant 0 : index
    %0 = vector.load %arg1[%c0, %c0_0] : memref<16x32xf32, #tpu.memory_space<vmem>>, vector<16x32xf32>
    %c0_1 = arith.constant 0 : index
    %c0_2 = arith.constant 0 : index
    %1 = vector.load %arg2[%c0_1, %c0_2] : memref<32x96xf32, #tpu.memory_space<vmem>>, vector<32x96xf32>
    %cst = arith.constant dense<0.000000e+00> : vector<16x96xf32>
    %2 = tpu.matmul %0, %1, %cst {dimension_numbers = #tpu.dot_dimension_numbers<[1], [0], [0], [1], [0, 0, 1, 1], [], []>} : vector<16x32xf32>, vector<32x96xf32>, vector<16x96xf32> -> vector<16x96xf32>
    %c0_3 = arith.constant 0 : index
    %c0_4 = arith.constant 0 : index
    %3 = vector.load %arg3[%c0_3, %c0_4] : memref<1x96xf32, #tpu.memory_space<vmem>>, vector<1x96xf32>
    %4 = vector.broadcast %3 : vector<1x96xf32> to vector<16x96xf32>
    %5 = arith.addf %2, %4 : vector<16x96xf32>
    %c0_5 = arith.constant 0 : index
    %c0_6 = arith.constant 0 : index
    %6 = vector.load %arg4[%c0_5, %c0_6] : memref<16x96xf32, #tpu.memory_space<vmem>>, vector<16x96xf32>
    tpu.vector_store %arg4[%c0_5, %c0_6], %5 {strides = array<i32>} : memref<16x96xf32, #tpu.memory_space<vmem>>, vector<16x96xf32>,
    return
  }
  func.func @transform_0(%arg0: i32) -> (i32, i32) {
    %c0_i32 = arith.constant 0 : i32
    %c0_i32_0 = arith.constant 0 : i32
    return %arg0, %c0_i32 : i32, i32
  }
  func.func @transform_1(%arg0: i32) -> (i32, i32) {
    %c0_i32 = arith.constant 0 : i32
    %c0_i32_0 = arith.constant 0 : i32
    %c0_i32_1 = arith.constant 0 : i32
    return %c0_i32, %c0_i32_0 : i32, i32
  }
  func.func @transform_2(%arg0: i32) -> (i32, i32) {
    %c0_i32 = arith.constant 0 : i32
    %c0_i32_0 = arith.constant 0 : i32
    %c0_i32_1 = arith.constant 0 : i32
    return %c0_i32, %c0_i32_0 : i32, i32
  }
  func.func @transform_3(%arg0: i32) -> (i32, i32) {
    %c0_i32 = arith.constant 0 : i32
    %c0_i32_0 = arith.constant 0 : i32
    return %arg0, %c0_i32 : i32, i32
  }
}

</mosaic_0001>

<bundles_post_ra>
// kernel: tpu_custom_call.1
= control target key start
LH: loop header
LB: loop body
LE: loop exit
PB: predicated region body
PF: predicated region fallthrough
CT: control target
= control target key end

     0   :  { %6 = vsyncpa [#allocation3], 0  ;;  %s114_s0 = inlined_call_operand.hbm [shape: f32[8,128], index: 0, kind: input, shape index: {}]   ;;  %s115_s1 = inlined_call_operand.hbm [shape: f32[8,128], index: 1, kind: output, shape index: {}]  }
   0x1   :  { %7 = vsyncpa [#allocation4], 0  ;;  %s13_s8 = sshll.u32 %s114_s0, 4  ;;  %s96_s9 = smov [#allocation2]   ;;  %s14_s8 = int_to_ptr.hbm [resolvable:$true] %s13_s8 }
   0x2   :  { %s15_s10 = sshll.u32 %s96_s9, 4  ;;  %s16_s10 = int_to_ptr.vmem [resolvable:$true] %s15_s10 }
   0x3   :  { %18 = dma.hbm_to_vmem [thread:$0]  %s14_s8, 128, %s16_s10, [#allocation3]  }
   0x4   :  { %92 = dma.done.wait [#allocation3], 128  }
   0x5   :  { %93 = vsyncadd [#allocation3], 4294967168  ;;  %s97_s11 = smov [#allocation5]   ;;  %s32_s15 = sshll.u32 %s115_s1, 4  ;;  %v23_v0 = vld [vmem:[#allocation2] sm:$0xff]  ;;  %s33_s15 = int_to_ptr.hbm [resolvable:$true] %s32_s15 }
   0x6   :  { %s30_s12 = sshll.u32 %s97_s11, 4  ;;  %24 = vst [vmem:[#allocation5] sm:$0xff] %v23_v0  ;;  %s31_s12 = int_to_ptr.vmem [resolvable:$true] %s30_s12 }
   0x7   :  { %35 = dma.vmem_to_hbm [thread:$0]  %s31_s12, 128, %s33_s15, [#allocation4]  }
   0x8   :  { %94 = dma.done.wait [#allocation4], 128  }
   0x9   :  { %95 = vsyncadd [#allocation4], 4294967168 }
   0xa   :  { %40 = vsyncpa [#allocation3], 1 }
   0xb   :  { %41 = vsyncpa [#allocation4], 1 }

// kernel: tpu_custom_call.1
= control target key start
LH: loop header
LB: loop body
LE: loop exit
PB: predicated region body
PF: predicated region fallthrough
CT: control target
= control target key end

     0   :  { %8 = vsyncpa [#allocation3], 0  ;;  %s246_s0 = inlined_call_operand.hbm [shape: f32[16,32], index: 0, kind: input, shape index: {}]   ;;  %s247_s1 = inlined_call_operand.hbm [shape: f32[32,96], index: 1, kind: input, shape index: {}]   ;;  %s248_s2 = inlined_call_operand.vmem [shape: f32[1,96], index: 2, kind: input, shape index: {}]   ;;  %s249_s3 = inlined_call_operand.hbm [shape: f32[16,96], index: 3, kind: output, shape index: {}]  }
   0x1   :  { %9 = vsyncpa [#allocation6], 0 }
   0x2   :  { %10 = vsyncpa [#allocation4], 0  ;;  %s15_s14 = sshll.u32 %s246_s0, 4  ;;  %s200_s15 = smov [#allocation2]   ;;  %s16_s14 = int_to_ptr.hbm [resolvable:$true] %s15_s14 }
   0x3   :  { %s17_s16 = sshll.u32 %s200_s15, 4  ;;  %s28_s19 = sshll.u32 %s247_s1, 4  ;;  %s18_s16 = int_to_ptr.vmem [resolvable:$true] %s17_s16  ;;  %s29_s19 = int_to_ptr.hbm [resolvable:$true] %s28_s19 }
   0x4   :  { %s201_s20 = smov 128   ;;  %s202_s21 = smov 8  }
   0x5   :  { %23 = dma.hbm_to_vmem [thread:$0]  %s16_s14, 256, %s18_s16, [#allocation3], %s201_s20, %s201_s20, %s202_s21  }
   0x6   :  { %s203_s22 = smov [#allocation5]  }
   0x7   :  { %s30_s23 = sshll.u32 %s203_s22, 4  ;;  %s31_s23 = int_to_ptr.vmem [resolvable:$true] %s30_s23 }
   0x8   :  { %36 = dma.hbm_to_vmem [thread:$0]  %s29_s19, 512, %s31_s23, [#allocation6], %s201_s20, %s201_s20, %s202_s21  }
   0x9   :  { %194 = dma.done.wait [#allocation3], 256  }
   0xa   :  { %195 = vsyncadd [#allocation3], 4294967040 }
   0xb   :  { %196 = dma.done.wait [#allocation6], 512  }
   0xc   :  { %197 = vsyncadd [#allocation6], 4294966784  ;;  %v52_v0 = vld [vmem:[#allocation5 + $0x18] sm:$0xff]  ;;  %v51_v1 = vld [vmem:[#allocation5 + $0x10] sm:$0xff]  ;;  %vm57_vm0 = vcmask 261120   ;;  %s204_s24 = smov [#allocation7]  }
   0xd   :  { %76 = vmatpush.msra.mxu0 %v52_v0  ;;  %112 = vmatpush.msra.mxu1 %v52_v0  ;;  %v50_v2 = vld [vmem:[#allocation5 + $0x8] sm:$0xff]  ;;  %v49_v3 = vld [vmem:[#allocation5] sm:$0xff]  ;;  %v47_v4 = vld [vmem:[#allocation2] sm:$0xff]  ;;  %s94_s25 = sshll.u32 %s204_s24, 4  ;;  %s96_s28 = sshll.u32 %s249_s3, 4  ;;  %vm87_vm1 = vcmask 785408   ;;  %s95_s25 = int_to_ptr.vmem [resolvable:$true] %s94_s25  ;;  %s97_s28 = int_to_ptr.hbm [resolvable:$true] %s96_s28 }
   0xe   :  { %v48_v5 = vld [vmem:[#allocation2 + $0x8] sm:$0xff]  ;;  %v121_v6 = vld [vmem:[%s248_s2] ss:$0 sm:$0xff] }
   0xf   :  { %77 = vmatpush.msra.mxu0 %v51_v1  ;;  %113 = vmatpush.msra.mxu1 %v51_v1 }
  0x11   :  { %78 = vmatpush.msra.mxu0 %v50_v2  ;;  %114 = vmatpush.msra.mxu1 %v50_v2 }
  0x13   :  { %79 = vmatpush.msra.mxu0 %v49_v3  ;;  %115 = vmatpush.msra.mxu1 %v49_v3 }
  0x14   :  { %110 = vmatmul.msk.f32.vlgmr.msra.gmra.mxu0 %vm57_vm0, %v47_v4  ;;  %111 = vmatmul.msk.f32.vlgmr.msra.gmra.mxu1 %vm57_vm0, %v48_v5 }
  0x91   :  { %v81_v7 = vpop.f32.mrf.mxu0  ;;  %v84_v8 = vpop.f32.mrf.mxu1 }
  0x92   :  { %v82_v9 = vadd.f32 %v121_v6, %v81_v7  ;;  %v85_v10 = vadd.f32 %v121_v6, %v84_v8 }
  0x94   :  { %88 = vst.msk [vmem:[#allocation7] sm:$0xff] %vm87_vm1, %v82_v9 }
  0x95   :  { %89 = vst.msk [vmem:[#allocation7 + $0x8] sm:$0xff] %vm87_vm1, %v85_v10 }
  0x96   :  { %102 = dma.vmem_to_hbm [thread:$0]  %s95_s25, 256, %s97_s28, [#allocation4], %s201_s20, %s201_s20, %s202_s21  }
  0x97   :  { %198 = dma.done.wait [#allocation4], 256  }
  0x98   :  { %199 = vsyncadd [#allocation4], 4294967040 }
  0x99   :  { %107 = vsyncpa [#allocation3], 1 }
  0x9a   :  { %108 = vsyncpa [#allocation6], 1 }
  0x9b   :  { %109 = vsyncpa [#allocation4], 1 }

</bundles_post_ra>
